<compile_context>
chip_gen: v5e
topology: v5e:2x2
jax: 0.10.0
libtpu: 0.0.40
codegen_flags: <defaults>
</compile_context>

<pallas_src>
import jax
import jax.numpy as jnp
from jax.experimental import pallas as pl
from jax.experimental.pallas import tpu as pltpu


# ----------------------------------------------------------------------------
# Fused kernel
# ----------------------------------------------------------------------------

def _ring_features(x):
    """Symmetric 1-ring feature functions of MeshConv, in (C, E) layout.

    x: (C, E).  Returns (5*C, E) = concat([f0, f1, f2, f3, f4]) along channels,
    where the 1-ring neighbors are the ring shifts e±1, e±2 (wrap-around).
    The symmetric functions (sum / |diff|) make the result independent of the
    roll direction convention.
    """
    E = x.shape[-1]
    n_p1 = pltpu.roll(x, E - 1, axis=1)   # x[:, (e + 1) % E]
    n_m1 = pltpu.roll(x, 1, axis=1)       # x[:, (e - 1) % E]
    n_p2 = pltpu.roll(x, E - 2, axis=1)   # x[:, (e + 2) % E]
    n_m2 = pltpu.roll(x, 2, axis=1)       # x[:, (e - 2) % E]
    f0 = x
    f1 = n_p1 + n_m1
    f2 = n_p2 + n_m2
    f3 = jnp.abs(n_p1 - n_m1)
    f4 = jnp.abs(n_p2 - n_m2)
    return jnp.concatenate([f0, f1, f2, f3, f4], axis=0)   # (5*C, E)


def _mresconv_kernel(x_ref, w0_ref, wr_ref, s_ref, t_ref, o_ref):
    """Whole MResConv forward for one batch element.

    x_ref : (Cin, E)              input edge features (channels on sublanes, edges on lanes)
    w0_ref: (Cout, 5*Cin)         conv0 weight, kernel-position major over input channels
    wr_ref: (skips, Cout, 5*Cout) residual-branch conv weights
    s_ref : (skips, Cout, 1)      folded eval-mode BN scale
    t_ref : (skips, Cout, 1)      folded eval-mode BN shift
    o_ref : (Cout, E)             output
    """
    skips = wr_ref.shape[0]

    # x = conv0(x, mesh) : one MXU matmul over the concatenated ring features.
    h = jnp.dot(w0_ref[...], _ring_features(x_ref[...]),
                preferred_element_type=jnp.float32)        # (Cout, E)
    h1 = h                                                  # x1 = x

    for i in range(skips):                                  # static unroll
        # x = bn_i(relu(x))   (eval-mode BN folded to per-channel scale/shift)
        a = jnp.maximum(h, 0.0) * s_ref[i] + t_ref[i]       # (Cout, E)
        # x = conv_i(x, mesh)
        h = jnp.dot(wr_ref[i], _ring_features(a),
                    preferred_element_type=jnp.float32)     # (Cout, E)

    # x += x1 ; x = relu(x)
    o_ref[...] = jnp.maximum(h + h1, 0.0)


# ----------------------------------------------------------------------------
# Wrapper
# ----------------------------------------------------------------------------

def mresconv_forward(x, w0, wr, bn_scale, bn_shift):
    """Fused MResConv forward.

    x        : (B, Cin, E)  float32  (PyTorch (N, Cin, E, 1) with the trailing 1 squeezed)
    w0       : (Cout, Cin, 1, 5)           conv0 weight (bias=False)
    wr       : (skips, Cout, Cout, 1, 5)   residual-branch conv weights
    bn_scale : (skips, Cout)  eval-mode BN scale  = gamma / sqrt(var + eps)
    bn_shift : (skips, Cout)  eval-mode BN shift  = beta - mean * scale
    returns  : (B, Cout, E) float32
    """
    B, Cin, E = x.shape
    Cout = w0.shape[0]
    skips = wr.shape[0]

    # Reshape weights so each MeshConv is a single (Cout, 5*C) x (5*C, E) matmul.
    # w[o, c, 0, k] -> wm[o, k*C + c]  (matches the feature concat order in-kernel).
    w0m = jnp.transpose(w0[:, :, 0, :], (0, 2, 1)).reshape(Cout, 5 * Cin)
    wrm = jnp.transpose(wr[:, :, :, 0, :], (0, 1, 3, 2)).reshape(skips, Cout, 5 * Cout)
    s = bn_scale.reshape(skips, Cout, 1).astype(jnp.float32)
    t = bn_shift.reshape(skips, Cout, 1).astype(jnp.float32)

    return pl.pallas_call(
        _mresconv_kernel,
        out_shape=jax.ShapeDtypeStruct((B, Cout, E), jnp.float32),
        grid=(B,),
        in_specs=[
            pl.BlockSpec((None, Cin, E), lambda b: (b, 0, 0)),           # x, per-batch
            pl.BlockSpec((Cout, 5 * Cin), lambda b: (0, 0)),             # conv0 weight
            pl.BlockSpec((skips, Cout, 5 * Cout), lambda b: (0, 0, 0)),  # residual weights
            pl.BlockSpec((skips, Cout, 1), lambda b: (0, 0, 0)),         # BN scale
            pl.BlockSpec((skips, Cout, 1), lambda b: (0, 0, 0)),         # BN shift
        ],
        out_specs=pl.BlockSpec((None, Cout, E), lambda b: (b, 0, 0)),
        compiler_params=pltpu.CompilerParams(dimension_semantics=("arbitrary",)),
    )(x.astype(jnp.float32), w0m, wrm, s, t)


# ----------------------------------------------------------------------------
# Pure-JAX reference (same ring neighborhood, explicit gather formulation)
# ----------------------------------------------------------------------------

def _meshconv_ref(x_bce, w):
    B, C, E = x_bce.shape
    xe = jnp.transpose(x_bce, (0, 2, 1))                                 # (B, E, C)
    e = jnp.arange(E)
    gi = jnp.stack([e, (e + 1) % E, (e + 2) % E, (e - 1) % E, (e - 2) % E], axis=1)
    g = xe[:, gi, :]                                                     # (B, E, 5, C)
    feats = jnp.stack(
        [g[:, :, 0],
         g[:, :, 1] + g[:, :, 3],
         g[:, :, 2] + g[:, :, 4],
         jnp.abs(g[:, :, 1] - g[:, :, 3]),
         jnp.abs(g[:, :, 2] - g[:, :, 4])], axis=2)                      # (B, E, 5, C)
    wk = w[:, :, 0, :]                                                   # (Cout, Cin, 5)
    return jnp.einsum('bekc,ock->boe', feats, wk,
                      precision=jax.lax.Precision.HIGHEST)               # (B, Cout, E)


def mresconv_ref(x, w0, wr, bn_scale, bn_shift):
    h = _meshconv_ref(x, w0)
    h1 = h
    for i in range(wr.shape[0]):
        a = jnp.maximum(h, 0.0) * bn_scale[i][None, :, None] + bn_shift[i][None, :, None]
        h = _meshconv_ref(a, wr[i])
    return jnp.maximum(h + h1, 0.0)


# ----------------------------------------------------------------------------
if __name__ == "__main__":
    B, Cin, Cout, E, skips = 2, 5, 16, 128, 2   # Cin=5: MeshCNN edge-feature count

    key = jax.random.PRNGKey(0)
    kx, k0, kr, kg, kb, km, kv = jax.random.split(key, 7)
    x = jax.random.normal(kx, (B, Cin, E), jnp.float32)
    w0 = 0.1 * jax.random.normal(k0, (Cout, Cin, 1, 5), jnp.float32)
    wr = 0.1 * jax.random.normal(kr, (skips, Cout, Cout, 1, 5), jnp.float32)

    # Eval-mode BatchNorm parameters folded to per-channel scale/shift.
    gamma = 1.0 + 0.1 * jax.random.normal(kg, (skips, Cout), jnp.float32)
    beta = 0.1 * jax.random.normal(kb, (skips, Cout), jnp.float32)
    running_mean = 0.1 * jax.random.normal(km, (skips, Cout), jnp.float32)
    running_var = 1.0 + 0.1 * jnp.abs(jax.random.normal(kv, (skips, Cout), jnp.float32))
    eps = 1e-5
    bn_scale = gamma / jnp.sqrt(running_var + eps)
    bn_shift = beta - running_mean * bn_scale

    fwd = jax.jit(mresconv_forward)
    out = fwd(x, w0, wr, bn_scale, bn_shift)
    jax.block_until_ready(out)

    assert out.shape == (B, Cout, E) and out.dtype == jnp.float32
    ref = mresconv_ref(x, w0, wr, bn_scale, bn_shift)
    max_err = float(jnp.max(jnp.abs(out - ref)))
    assert max_err < 5e-2, f"mismatch vs reference: max abs err = {max_err}"

    print("KERNEL_OK")
</pallas_src>

<mosaic_0001>
module attributes {stable_mosaic.version = 11 : i64} {
  func.func @_mresconv_kernel(%arg0: i32, %arg1: memref<1x5x128xf32, #tpu.memory_space<vmem>>, %arg2: memref<16x25xf32, #tpu.memory_space<vmem>>, %arg3: memref<2x16x80xf32, #tpu.memory_space<vmem>>, %arg4: memref<2x16x1xf32, #tpu.memory_space<vmem>>, %arg5: memref<2x16x1xf32, #tpu.memory_space<vmem>>, %arg6: memref<1x16x128xf32, #tpu.memory_space<vmem>>) attributes {dimension_semantics = [#tpu.dimension_semantics<arbitrary>], iteration_bounds = array<i64: 2>, scalar_prefetch = 0 : i64, scratch_operands = 0 : i64, tpu.core_type = #tpu.core_type<tc>, window_params = [{transform_indices = @transform_0, window_bounds = array<i64: 1, 5, 128>}, {pipeline_mode = #tpu.pipeline_mode<synchronous>, transform_indices = @transform_1, window_bounds = array<i64: 16, 25>}, {pipeline_mode = #tpu.pipeline_mode<synchronous>, transform_indices = @transform_2, window_bounds = array<i64: 2, 16, 80>}, {pipeline_mode = #tpu.pipeline_mode<synchronous>, transform_indices = @transform_3, window_bounds = array<i64: 2, 16, 1>}, {pipeline_mode = #tpu.pipeline_mode<synchronous>, transform_indices = @transform_4, window_bounds = array<i64: 2, 16, 1>}, {transform_indices = @transform_5, window_bounds = array<i64: 1, 16, 128>}]} {
    %c0 = arith.constant 0 : index
    %c0_0 = arith.constant 0 : index
    %0 = vector.load %arg2[%c0, %c0_0] : memref<16x25xf32, #tpu.memory_space<vmem>>, vector<16x25xf32>
    %c0_1 = arith.constant 0 : index
    %c0_2 = arith.constant 0 : index
    %c0_3 = arith.constant 0 : index
    %1 = vector.load %arg1[%c0_1, %c0_2, %c0_3] : memref<1x5x128xf32, #tpu.memory_space<vmem>>, vector<1x5x128xf32>
    %2 = vector.shape_cast %1 : vector<1x5x128xf32> to vector<5x128xf32>
    %c127_i32 = arith.constant 127 : i32
    %3 = tpu.dynamic_rotate %2 by %c127_i32 dim 1 : vector<5x128xf32>, i32 -> vector<5x128xf32>
    %c1_i32 = arith.constant 1 : i32
    %4 = tpu.dynamic_rotate %2 by %c1_i32 dim 1 : vector<5x128xf32>, i32 -> vector<5x128xf32>
    %c126_i32 = arith.constant 126 : i32
    %5 = tpu.dynamic_rotate %2 by %c126_i32 dim 1 : vector<5x128xf32>, i32 -> vector<5x128xf32>
    %c2_i32 = arith.constant 2 : i32
    %6 = tpu.dynamic_rotate %2 by %c2_i32 dim 1 : vector<5x128xf32>, i32 -> vector<5x128xf32>
    %7 = arith.addf %3, %4 : vector<5x128xf32>
    %8 = arith.addf %5, %6 : vector<5x128xf32>
    %9 = arith.subf %3, %4 : vector<5x128xf32>
    %10 = math.absf %9 : vector<5x128xf32>
    %11 = arith.subf %5, %6 : vector<5x128xf32>
    %12 = math.absf %11 : vector<5x128xf32>
    %13 = tpu.concatenate %2, %7, %8, %10, %12 in 0 : vector<5x128xf32>, vector<5x128xf32>, vector<5x128xf32>, vector<5x128xf32>, vector<5x128xf32> -> vector<25x128xf32>
    %cst = arith.constant dense<0.000000e+00> : vector<16x128xf32>
    %14 = tpu.matmul %0, %13, %cst {dimension_numbers = #tpu.dot_dimension_numbers<[1], [0], [0], [1], [0, 0, 1, 1], [], []>} : vector<16x25xf32>, vector<25x128xf32>, vector<16x128xf32> -> vector<16x128xf32>
    %cst_4 = arith.constant 0.000000e+00 : f32
    %15 = vector.broadcast %cst_4 : f32 to vector<16x128xf32>
    %16 = arith.maximumf %14, %15 : vector<16x128xf32>
    %c0_5 = arith.constant 0 : index
    %c0_6 = arith.constant 0 : index
    %c0_7 = arith.constant 0 : index
    %17 = vector.load %arg4[%c0_5, %c0_6, %c0_7] : memref<2x16x1xf32, #tpu.memory_space<vmem>>, vector<1x16x1xf32>
    %18 = vector.shape_cast %17 : vector<1x16x1xf32> to vector<16x1xf32>
    %19 = vector.broadcast %18 : vector<16x1xf32> to vector<16x128xf32>
    %20 = arith.mulf %16, %19 : vector<16x128xf32>
    %c0_8 = arith.constant 0 : index
    %c0_9 = arith.constant 0 : index
    %c0_10 = arith.constant 0 : index
    %21 = vector.load %arg5[%c0_8, %c0_9, %c0_10] : memref<2x16x1xf32, #tpu.memory_space<vmem>>, vector<1x16x1xf32>
    %22 = vector.shape_cast %21 : vector<1x16x1xf32> to vector<16x1xf32>
    %23 = vector.broadcast %22 : vector<16x1xf32> to vector<16x128xf32>
    %24 = arith.addf %20, %23 : vector<16x128xf32>
    %c0_11 = arith.constant 0 : index
    %c0_12 = arith.constant 0 : index
    %c0_13 = arith.constant 0 : index
    %25 = vector.load %arg3[%c0_11, %c0_12, %c0_13] : memref<2x16x80xf32, #tpu.memory_space<vmem>>, vector<1x16x80xf32>
    %26 = vector.shape_cast %25 : vector<1x16x80xf32> to vector<16x80xf32>
    %c127_i32_14 = arith.constant 127 : i32
    %27 = tpu.dynamic_rotate %24 by %c127_i32_14 dim 1 : vector<16x128xf32>, i32 -> vector<16x128xf32>
    %c1_i32_15 = arith.constant 1 : i32
    %28 = tpu.dynamic_rotate %24 by %c1_i32_15 dim 1 : vector<16x128xf32>, i32 -> vector<16x128xf32>
    %c126_i32_16 = arith.constant 126 : i32
    %29 = tpu.dynamic_rotate %24 by %c126_i32_16 dim 1 : vector<16x128xf32>, i32 -> vector<16x128xf32>
    %c2_i32_17 = arith.constant 2 : i32
    %30 = tpu.dynamic_rotate %24 by %c2_i32_17 dim 1 : vector<16x128xf32>, i32 -> vector<16x128xf32>
    %31 = arith.addf %27, %28 : vector<16x128xf32>
    %32 = arith.addf %29, %30 : vector<16x128xf32>
    %33 = arith.subf %27, %28 : vector<16x128xf32>
    %34 = math.absf %33 : vector<16x128xf32>
    %35 = arith.subf %29, %30 : vector<16x128xf32>
    %36 = math.absf %35 : vector<16x128xf32>
    %37 = tpu.concatenate %24, %31, %32, %34, %36 in 0 : vector<16x128xf32>, vector<16x128xf32>, vector<16x128xf32>, vector<16x128xf32>, vector<16x128xf32> -> vector<80x128xf32>
    %cst_18 = arith.constant dense<0.000000e+00> : vector<16x128xf32>
    %38 = tpu.matmul %26, %37, %cst_18 {dimension_numbers = #tpu.dot_dimension_numbers<[1], [0], [0], [1], [0, 0, 1, 1], [], []>} : vector<16x80xf32>, vector<80x128xf32>, vector<16x128xf32> -> vector<16x128xf32>
    %cst_19 = arith.constant 0.000000e+00 : f32
    %39 = vector.broadcast %cst_19 : f32 to vector<16x128xf32>
    %40 = arith.maximumf %38, %39 : vector<16x128xf32>
    %c1 = arith.constant 1 : index
    %c0_20 = arith.constant 0 : index
    %c0_21 = arith.constant 0 : index
    %41 = vector.load %arg4[%c1, %c0_20, %c0_21] : memref<2x16x1xf32, #tpu.memory_space<vmem>>, vector<1x16x1xf32>
    %42 = vector.shape_cast %41 : vector<1x16x1xf32> to vector<16x1xf32>
    %43 = vector.broadcast %42 : vector<16x1xf32> to vector<16x128xf32>
    %44 = arith.mulf %40, %43 : vector<16x128xf32>
    %c1_22 = arith.constant 1 : index
    %c0_23 = arith.constant 0 : index
    %c0_24 = arith.constant 0 : index
    %45 = vector.load %arg5[%c1_22, %c0_23, %c0_24] : memref<2x16x1xf32, #tpu.memory_space<vmem>>, vector<1x16x1xf32>
    %46 = vector.shape_cast %45 : vector<1x16x1xf32> to vector<16x1xf32>
    %47 = vector.broadcast %46 : vector<16x1xf32> to vector<16x128xf32>
    %48 = arith.addf %44, %47 : vector<16x128xf32>
    %c1_25 = arith.constant 1 : index
    %c0_26 = arith.constant 0 : index
    %c0_27 = arith.constant 0 : index
    %49 = vector.load %arg3[%c1_25, %c0_26, %c0_27] : memref<2x16x80xf32, #tpu.memory_space<vmem>>, vector<1x16x80xf32>
    %50 = vector.shape_cast %49 : vector<1x16x80xf32> to vector<16x80xf32>
    %c127_i32_28 = arith.constant 127 : i32
    %51 = tpu.dynamic_rotate %48 by %c127_i32_28 dim 1 : vector<16x128xf32>, i32 -> vector<16x128xf32>
    %c1_i32_29 = arith.constant 1 : i32
    %52 = tpu.dynamic_rotate %48 by %c1_i32_29 dim 1 : vector<16x128xf32>, i32 -> vector<16x128xf32>
    %c126_i32_30 = arith.constant 126 : i32
    %53 = tpu.dynamic_rotate %48 by %c126_i32_30 dim 1 : vector<16x128xf32>, i32 -> vector<16x128xf32>
    %c2_i32_31 = arith.constant 2 : i32
    %54 = tpu.dynamic_rotate %48 by %c2_i32_31 dim 1 : vector<16x128xf32>, i32 -> vector<16x128xf32>
    %55 = arith.addf %51, %52 : vector<16x128xf32>
    %56 = arith.addf %53, %54 : vector<16x128xf32>
    %57 = arith.subf %51, %52 : vector<16x128xf32>
    %58 = math.absf %57 : vector<16x128xf32>
    %59 = arith.subf %53, %54 : vector<16x128xf32>
    %60 = math.absf %59 : vector<16x128xf32>
    %61 = tpu.concatenate %48, %55, %56, %58, %60 in 0 : vector<16x128xf32>, vector<16x128xf32>, vector<16x128xf32>, vector<16x128xf32>, vector<16x128xf32> -> vector<80x128xf32>
    %cst_32 = arith.constant dense<0.000000e+00> : vector<16x128xf32>
    %62 = tpu.matmul %50, %61, %cst_32 {dimension_numbers = #tpu.dot_dimension_numbers<[1], [0], [0], [1], [0, 0, 1, 1], [], []>} : vector<16x80xf32>, vector<80x128xf32>, vector<16x128xf32> -> vector<16x128xf32>
    %63 = arith.addf %62, %14 : vector<16x128xf32>
    %cst_33 = arith.constant 0.000000e+00 : f32
    %64 = vector.broadcast %cst_33 : f32 to vector<16x128xf32>
    %65 = arith.maximumf %63, %64 : vector<16x128xf32>
    %c0_34 = arith.constant 0 : index
    %c0_35 = arith.constant 0 : index
    %c0_36 = arith.constant 0 : index
    %66 = vector.load %arg6[%c0_34, %c0_35, %c0_36] : memref<1x16x128xf32, #tpu.memory_space<vmem>>, vector<1x16x128xf32>
    %67 = vector.shape_cast %66 : vector<1x16x128xf32> to vector<16x128xf32>
    %68 = vector.shape_cast %65 : vector<16x128xf32> to vector<1x16x128xf32>
    tpu.vector_store %arg6[%c0_34, %c0_35, %c0_36], %68 {strides = array<i32>} : memref<1x16x128xf32, #tpu.memory_space<vmem>>, vector<1x16x128xf32>,
    return
  }
  func.func @transform_0(%arg0: i32) -> (i32, i32, i32) {
    %c0_i32 = arith.constant 0 : i32
    %c0_i32_0 = arith.constant 0 : i32
    %c0_i32_1 = arith.constant 0 : i32
    return %arg0, %c0_i32, %c0_i32_0 : i32, i32, i32
  }
  func.func @transform_1(%arg0: i32) -> (i32, i32) {
    %c0_i32 = arith.constant 0 : i32
    %c0_i32_0 = arith.constant 0 : i32
    %c0_i32_1 = arith.constant 0 : i32
    return %c0_i32, %c0_i32_0 : i32, i32
  }
  func.func @transform_2(%arg0: i32) -> (i32, i32, i32) {
    %c0_i32 = arith.constant 0 : i32
    %c0_i32_0 = arith.constant 0 : i32
    %c0_i32_1 = arith.constant 0 : i32
    %c0_i32_2 = arith.constant 0 : i32
    return %c0_i32, %c0_i32_0, %c0_i32_1 : i32, i32, i32
  }
  func.func @transform_3(%arg0: i32) -> (i32, i32, i32) {
    %c0_i32 = arith.constant 0 : i32
    %c0_i32_0 = arith.constant 0 : i32
    %c0_i32_1 = arith.constant 0 : i32
    %c0_i32_2 = arith.constant 0 : i32
    return %c0_i32, %c0_i32_0, %c0_i32_1 : i32, i32, i32
  }
  func.func @transform_4(%arg0: i32) -> (i32, i32, i32) {
    %c0_i32 = arith.constant 0 : i32
    %c0_i32_0 = arith.constant 0 : i32
    %c0_i32_1 = arith.constant 0 : i32
    %c0_i32_2 = arith.constant 0 : i32
    return %c0_i32, %c0_i32_0, %c0_i32_1 : i32, i32, i32
  }
  func.func @transform_5(%arg0: i32) -> (i32, i32, i32) {
    %c0_i32 = arith.constant 0 : i32
    %c0_i32_0 = arith.constant 0 : i32
    %c0_i32_1 = arith.constant 0 : i32
    return %arg0, %c0_i32, %c0_i32_0 : i32, i32, i32
  }
}

</mosaic_0001>

<bundles_post_ra>
// kernel: mresconv_forward.1
= control target key start
LH: loop header
LB: loop body
LE: loop exit
PB: predicated region body
PF: predicated region fallthrough
CT: control target
= control target key end

     0   :  { %10 = vsyncpa [#allocation3], 0  ;;  %s906_s0 = inlined_call_operand.vmem [shape: f32[2,5,128], index: 0, kind: input, shape index: {}]   ;;  %s907_s1 = inlined_call_operand.vmem [shape: f32[16,25], index: 1, kind: input, shape index: {}]   ;;  %s908_s2 = inlined_call_operand.vmem [shape: f32[2,16,80], index: 2, kind: input, shape index: {}]   ;;  %s909_s3 = inlined_call_operand.vmem [shape: f32[2,16,1], index: 3, kind: input, shape index: {}]   ;;  %s910_s4 = inlined_call_operand.vmem [shape: f32[2,16,1], index: 4, kind: input, shape index: {}]   ;;  %s911_s5 = inlined_call_operand.hbm [shape: f32[2,16,128], index: 5, kind: output, shape index: {}]  }
   0x1   :  { %12 = vsyncpa [#allocation3 + $0x1], 0  ;;  %s739_s18 = smov 0   ;;  %s741_s19 = smov 0  }
   0x2   :  { %s743_s20 = smov 0   ;;  %s745_s21 = smov 0  }
   0x3 LB: > { %s760_s22 = sadd.s32 4294967295, %s700_s21   ;;  %s554_s23 = sadd.s32 4294967294, %s700_s21   ;;  %s700_s21 = sphi %s745_s21, %s917_s21   ;;  %s696_s20 = sphi %s743_s20, %s916_s20   ;;  %s692_s19 = sphi %s741_s19, %s915_s19   ;;  %s688_s18 = sphi %s739_s18, %s914_s18  }
   0x4   : > { %s764_s24 = sadd.s32 1, %s700_s21   ;;  %s135_s25 = sadd.s32 1, %s696_s20 }
   0x5   : > { %s132_s26 = ssub.s32 %s700_s21, %s764_s24  ;;  %p145_p0 = scmp.ne.s32.totalorder %s696_s20, %s692_s19 }
   0x6   : > { %p133_p1 = scmp.eq.s32.totalorder %s132_s26, 0  ;;  %p146_p2 = scmp.eq.s32.totalorder %s760_s22, 1 }
   0x7   : > { %p151_p3 = scmp.ne.s32.totalorder %s692_s19, %s688_s18  ;;  %p152_p4 = scmp.eq.s32.totalorder %s554_s23, 1 }
   0x8   : > { %s775_s27 = scalar_select %p133_p1, %s696_s20, %s135_s25  }
   0x9   : > { %p777_p5 = por %p146_p2, %p145_p0  ;;  %p781_p6 = por %p152_p4, %p151_p3 }
   0xa   : > { %p557_p7 = scmp.ge.s32.totalorder %s700_s21, 1  ;;  %p189_p8 = scmp.lt.s32.totalorder %s700_s21, 3 }
   0xc   : > { %p190_p9 = pnand %p557_p7, %p189_p8 }
   0xd   : > { %p216_p10 = scmp.lt.s32.totalorder (!%p190_p9), %s760_s22, 1  ;;  %s702_s10 = smov (!%p190_p9), 127  }
   0xe   : > { %193 = sbr.rel (%p190_p9) target bundleno = 882 (0x372), region = 40  ;;  %s703_s11 = smov (!%p190_p9), 126  }
   0xf   : > { %s704_s12 = smov (!%p190_p9), 1   ;;  %s705_s13 = smov (!%p190_p9), 2  }
  0x10   : > { %s213_s14 = sand.u32 (!%p190_p9), 1, %s692_s19   ;;  %s578_s16 = sshll.u32 (!%p190_p9), %s760_s22, 4 }
  0x11   : > { %s558_s15 = sshll.u32 (!%p190_p9), %s213_s14, 4  ;;  %s488_s26 = scalar_lea.hbm (!%p190_p9), %s911_s5, %s578_s16 }
  0x12   : > { %s215_s17 = scalar_lea.vmem (!%p190_p9), [#allocation2], %s558_s15  ;;  %s477_s7 = scalar_lea.sflag (!%p190_p9), [#allocation3], %s213_s14 }
  0x13   : > { %s217_s30 = scalar_select %p216_p10, %s760_s22, 1  ;;  %v306_v1 = vld [vmem:[%s910_s4] sm:$0xff]  ;;  %v307_v2 = vld [vmem:[%s910_s4 + $0x8] sm:$0xff]  ;;  %v706_v3 = vmov 0   ;;  %vm264_vm0 = vcmask 1040384   ;;  %vm255_vm1 = vcmask 1043456  }
  0x14   : > { %637 = vset.pattern.permute.xlu1 %v706_v3  ;;  %636 = vset.pattern.permute.xlu0 %v706_v3  ;;  %v293_v4 = vld [vmem:[%s909_s3 + $0x8] sm:$0xff]  ;;  %v292_v7 = vld [vmem:[%s909_s3] sm:$0xff]  ;;  %vm251_vm2 = vcmask 1041408   ;;  %vm253_vm3 = vcmask 1046528   ;;  %vm249_vm4 = vcmask 1044480   ;;  %vm257_vm5 = vcmask 203776  }
  0x15   : > { %s559_s6 = sshll.u32 %s217_s30, 3  ;;  %635 = vset.pattern.permute.xlu2 %v706_v3  ;;  %v220_v23 = vld [vmem:[%s907_s1] sm:$0xff]  ;;  %v221_v25 = vld [vmem:[%s907_s1 + $0x8] sm:$0xff]  ;;  %v565_v38 = vld [vmem:[%s909_s3 + $0x10] sm:$0xff]  ;;  %vm350_vm6 = vcmask 654336   ;;  %s489_s30 = sshll.u32 %s215_s17, 4  ;;  %s490_s30 = int_to_ptr.vmem [resolvable:$true] %s489_s30 }
  0x16   : > { %s219_s9 = scalar_lea.vmem %s906_s0, %s559_s6  ;;  %301 = vperm.xlu2 %635, %v293_v4   ;;  %v566_v39 = vld [vmem:[%s909_s3 + $0x18] sm:$0xff]  ;;  %v567_v41 = vld [vmem:[%s910_s4 + $0x10] sm:$0xff]  ;;  %v320_v62 = vld [vmem:[%s908_s2] sm:$0xff]  ;;  %s491_s6 = sshll.u32 %s488_s26, 4  ;;  %s492_s6 = int_to_ptr.hbm [resolvable:$true] %s491_s6 }
  0x17   : > { %v222_v0 = vld [vmem:[%s219_s9] sm:$0x1f]  ;;  %v568_v40 = vld [vmem:[%s910_s4 + $0x18] sm:$0xff]  ;;  %v321_v63 = vld [vmem:[%s908_s2 + $0x8] sm:$0xff]  ;;  %s652_s8 = sshra.s32 %s492_s6, 4  ;;  %s653_s8 = int_to_ptr.hbm [resolvable:$true] %s652_s8 }
  0x18   : > { %223 = vrot.lane.b32.xlu1 %v222_v0, %s702_s10  ;;  %227 = vrot.lane.b32.xlu0 %v222_v0, %s703_s11  ;;  %s654_s22 = scalar_lea.hbm %s653_s8, 16  ;;  %p659_p0 = scmp.lt.s32.totalorder %s653_s8, %s911_s5 }
  0x19   : > { %p655_p11 = scmp.ne.s32.totalorder %s653_s8, %s654_s22 }
  0x1b   : > { %p656_p12 = pnand %p655_p11, %p777_p5 }
  0x1d   : > { %p657_p13 = pneg %p656_p12 }
  0x1e   : > { %296 = vperm.xlu2 %635, %v292_v7  }
  0x20   : > { %225 = vrot.lane.b32.xlu1 %v222_v0, %s704_s12  ;;  %229 = vrot.lane.b32.xlu0 %v222_v0, %s705_s13 }
  0x28   : > { %310 = vperm.xlu1 %637, %v306_v1   ;;  %315 = vperm.xlu0 %636, %v307_v2  }
  0x70   : > { %v302_v26 = vpop.permute.xlu2 %301 }
  0x78   : > { %v297_v28 = vpop.permute.xlu2 %296 }
  0x8a   : > { %v224_v5 = vpop.permute.xlu1 %223  ;;  %v228_v6 = vpop.permute.xlu0 %227 }
  0x92   : > { %v226_v8 = vpop.permute.xlu1 %225  ;;  %v230_v9 = vpop.permute.xlu0 %229 }
  0x93   : > { %v231_v10 = vadd.f32 %v226_v8, %v224_v5  ;;  %v233_v11 = vsub.f32 %v224_v5, %v226_v8  ;;  %v232_v12 = vadd.f32 %v230_v9, %v228_v6  ;;  %v235_v13 = vsub.f32 %v228_v6, %v230_v9 }
  0x95   : > { %v234_v14 = vand.u32 2147483647, %v233_v11  ;;  %v238_v15 = vrot.slane %v231_v10, 3  ;;  %v241_v16 = vrot.slane %v232_v12, 6  ;;  %v236_v17 = vand.u32 2147483647, %v235_v13 }
  0x97   : > { %v244_v18 = vrot.slane %v234_v14, 1  ;;  %v247_v19 = vrot.slane %v236_v17, 4  ;;  %v252_v21 = vsel %vm251_vm2, %v238_v15, %v241_v16  ;;  %v250_v24 = vsel %vm249_vm4, %v222_v0, %v238_v15 }
  0x99   : > { %560 = vmatpush.msk.msra.mxu0 %vm264_vm0, %v247_v19  ;;  %v256_v20 = vsel %vm255_vm1, %v244_v18, %v247_v19  ;;  %v254_v22 = vsel %vm253_vm3, %v252_v21, %v244_v18 }
  0x9a   : > { %v311_v30 = vpop.permute.xlu1 %310  ;;  %v316_v35 = vpop.permute.xlu0 %315 }
  0x9b   : > { %280 = vmatpush.msra.mxu0 %v256_v20 }
  0x9d   : > { %281 = vmatpush.msra.mxu0 %v254_v22 }
  0x9f   : > { %282 = vmatpush.msra.mxu0 %v250_v24 }
  0xa0   : > { %561 = vmatmul.msk.f32.vlgmr.msra.gmra.mxu0 %vm257_vm5, %v220_v23 }
  0xa8   : > { %562 = vmatmul.msk.f32.gmra.mxu0 %vm257_vm5, %v221_v25 }
 0x11d   : > { %v814_v27 = vpop.f32.mrf.mxu0 }
 0x11e   : > { %v290_v29 = vmax.f32 %v814_v27, 0.0 }
 0x120   : > { %v304_v31 = vmul.f32 %v297_v28, %v290_v29 }
 0x122   : > { %v817_v32 = vadd.f32 %v311_v30, %v304_v31 }
 0x124   : > { %334 = vrot.lane.b32.xlu0 %v817_v32, %s705_s13  ;;  %330 = vrot.lane.b32.xlu2 %v817_v32, %s703_s11 }
 0x125   : > { %v823_v33 = vpop.f32.mrf.mxu0 }
 0x126   : > { %v291_v34 = vmax.f32 %v823_v33, 0.0 }
 0x128   : > { %v305_v36 = vmul.f32 %v302_v26, %v291_v34  ;;  %v569_v34 = vld [vmem:[%s908_s2 + $0x10] sm:$0xff] }
 0x12a   : > { %v319_v37 = vadd.f32 %v316_v35, %v305_v36  ;;  %v570_v35 = vld [vmem:[%s908_s2 + $0x18] sm:$0xff] }
 0x12c   : > { %322 = vrot.lane.b32.xlu0 %v817_v32, %s702_s10  ;;  %336 = vrot.lane.b32.xlu1 %v319_v37, %s705_s13 }
 0x12d   : > { %332 = vrot.lane.b32.xlu2 %v319_v37, %s703_s11 }
 0x134   : > { %387 = vperm.xlu0 %636, %v565_v38   ;;  %324 = vrot.lane.b32.xlu1 %v319_v37, %s702_s10 }
 0x135   : > { %328 = vrot.lane.b32.xlu2 %v319_v37, %s704_s12 }
 0x13c   : > { %326 = vrot.lane.b32.xlu1 %v817_v32, %s704_s12 }
 0x13d   : > { %392 = vperm.xlu2 %635, %v566_v39  }
 0x144   : > { %407 = vperm.xlu1 %637, %v568_v40  }
 0x145   : > { %402 = vperm.xlu2 %635, %v567_v41  }
 0x17e   : > { %v331_v42 = vpop.permute.xlu2 %330 }
 0x187   : > { %v333_v43 = vpop.permute.xlu2 %332 }
 0x18f   : > { %v329_v50 = vpop.permute.xlu2 %328 }
 0x196   : > { %v335_v44 = vpop.permute.xlu0 %334 }
 0x197   : > { %v346_v46 = vsub.f32 %v331_v42, %v335_v44  ;;  %v340_v59 = vadd.f32 %v335_v44, %v331_v42  ;;  %v393_v0 = vpop.permute.xlu2 %392 }
 0x199   : > { %v348_v49 = vand.u32 2147483647, %v346_v46 }
 0x19e   : > { %v337_v45 = vpop.permute.xlu1 %336  ;;  %v323_v54 = vpop.permute.xlu0 %322 }
 0x19f   : > { %v347_v47 = vsub.f32 %v333_v43, %v337_v45  ;;  %v341_v58 = vadd.f32 %v337_v45, %v333_v43  ;;  %v403_v5 = vpop.permute.xlu2 %402 }
 0x1a1   : > { %v349_v48 = vand.u32 2147483647, %v347_v47 }
 0x1a3   : > { %363 = vmatpush.msra.mxu1 %v349_v48  ;;  %579 = vmatpush.msra.mxu3 %v349_v48 }
 0x1a5   : > { %364 = vmatpush.msra.mxu1 %v348_v49  ;;  %580 = vmatpush.msra.mxu3 %v348_v49 }
 0x1a6   : > { %v325_v51 = vpop.permute.xlu1 %324  ;;  %v388_v3 = vpop.permute.xlu0 %387 }
 0x1a7   : > { %v343_v52 = vsub.f32 %v325_v51, %v329_v50  ;;  %v339_v60 = vadd.f32 %v329_v50, %v325_v51 }
 0x1a9   : > { %v345_v53 = vand.u32 2147483647, %v343_v52 }
 0x1ab   : > { %365 = vmatpush.msra.mxu1 %v345_v53  ;;  %581 = vmatpush.msra.mxu3 %v345_v53 }
 0x1ae   : > { %v327_v55 = vpop.permute.xlu1 %326 }
 0x1af   : > { %v342_v56 = vsub.f32 %v323_v54, %v327_v55  ;;  %v338_v61 = vadd.f32 %v327_v55, %v323_v54 }
 0x1b1   : > { %v344_v57 = vand.u32 2147483647, %v342_v56 }
 0x1b3   : > { %366 = vmatpush.msra.mxu1 %v344_v57  ;;  %582 = vmatpush.msra.mxu3 %v344_v57 }
 0x1b5   : > { %367 = vmatpush.msra.mxu1 %v341_v58  ;;  %583 = vmatpush.msra.mxu3 %v341_v58 }
 0x1b6   : > { %v408_v10 = vpop.permute.xlu1 %407 }
 0x1b7   : > { %368 = vmatpush.msra.mxu1 %v340_v59  ;;  %584 = vmatpush.msra.mxu3 %v340_v59 }
 0x1b9   : > { %369 = vmatpush.msra.mxu1 %v339_v60  ;;  %585 = vmatpush.msra.mxu3 %v339_v60 }
 0x1bb   : > { %370 = vmatpush.msra.mxu1 %v338_v61  ;;  %586 = vmatpush.msra.mxu3 %v338_v61 }
 0x1bd   : > { %371 = vmatpush.msra.mxu1 %v319_v37  ;;  %587 = vmatpush.msra.mxu3 %v319_v37 }
 0x1bf   : > { %372 = vmatpush.msra.mxu1 %v817_v32  ;;  %588 = vmatpush.msra.mxu3 %v817_v32 }
 0x1c0   : > { %563 = vmatmul.msk.f32.vlgmr.msra.gmra.mxu1 %vm350_vm6, %v320_v62  ;;  %564 = vmatmul.msk.f32.vlgmr.msra.gmra.mxu3 %vm350_vm6, %v321_v63 }
 0x23d   : > { %v374_v1 = vpop.f32.mrf.mxu1 }
 0x23e   : > { %v380_v2 = vmax.f32 %v374_v1, 0.0 }
 0x240   : > { %v395_v4 = vmul.f32 %v388_v3, %v380_v2 }
 0x242   : > { %v410_v6 = vadd.f32 %v403_v5, %v395_v4 }
 0x243   : > { %v377_v7 = vpop.f32.mrf.mxu3 }
 0x244   : > { %v381_v8 = vmax.f32 %v377_v7, 0.0  ;;  %427 = vrot.lane.b32.xlu0 %v410_v6, %s705_s13  ;;  %423 = vrot.lane.b32.xlu2 %v410_v6, %s703_s11 }
 0x246   : > { %v396_v9 = vmul.f32 %v393_v0, %v381_v8 }
 0x248   : > { %v411_v11 = vadd.f32 %v408_v10, %v396_v9 }
 0x24a   : > { %429 = vrot.lane.b32.xlu1 %v411_v11, %s705_s13 }
 0x24c   : > { %425 = vrot.lane.b32.xlu0 %v411_v11, %s703_s11  ;;  %421 = vrot.lane.b32.xlu2 %v411_v11, %s704_s12  ;;  %s658_s11 = scalar_lea.hbm %s911_s5, 32 }
 0x24d   : > { %p660_p1 = scmp.lt.s32.totalorder %s658_s11, %s654_s22 }
 0x24f   : > { %p661_p2 = por %p660_p1, %p659_p0 }
 0x251   : > { %p662_p3 = pnand %p661_p2, %p657_p13 }
 0x252   : > { %417 = vrot.lane.b32.xlu1 %v411_v11, %s702_s10 }
 0x254   : > { %415 = vrot.lane.b32.xlu0 %v410_v6, %s702_s10 }
 0x25a   : > { %419 = vrot.lane.b32.xlu1 %v410_v6, %s704_s12 }
 0x29e   : > { %v424_v13 = vpop.permute.xlu2 %423 }
 0x2a6   : > { %v422_v20 = vpop.permute.xlu2 %421 }
 0x2b6   : > { %v428_v12 = vpop.permute.xlu0 %427 }
 0x2b7   : > { %v439_v16 = vsub.f32 %v424_v13, %v428_v12  ;;  %v433_v30 = vadd.f32 %v428_v12, %v424_v13 }
 0x2b9   : > { %v441_v19 = vand.u32 2147483647, %v439_v16 }
 0x2bc   : > { %v430_v14 = vpop.permute.xlu1 %429 }
 0x2be   : > { %v426_v15 = vpop.permute.xlu0 %425 }
 0x2bf   : > { %v440_v17 = vsub.f32 %v426_v15, %v430_v14  ;;  %v434_v29 = vadd.f32 %v430_v14, %v426_v15 }
 0x2c1   : > { %v442_v18 = vand.u32 2147483647, %v440_v17 }
 0x2c3   : > { %455 = vmatpush.msra.mxu2 %v442_v18 }
 0x2c4   : > { %v418_v21 = vpop.permute.xlu1 %417 }
 0x2c5   : > { %v436_v22 = vsub.f32 %v418_v21, %v422_v20  ;;  %456 = vmatpush.msra.mxu2 %v441_v19  ;;  %v432_v31 = vadd.f32 %v422_v20, %v418_v21 }
 0x2c6   : > { %v416_v24 = vpop.permute.xlu0 %415 }
 0x2c7   : > { %v438_v23 = vand.u32 2147483647, %v436_v22 }
 0x2c9   : > { %457 = vmatpush.msra.mxu2 %v438_v23 }
 0x2cc   : > { %v420_v25 = vpop.permute.xlu1 %419 }
 0x2cd   : > { %v435_v26 = vsub.f32 %v416_v24, %v420_v25  ;;  %v431_v32 = vadd.f32 %v420_v25, %v416_v24 }
 0x2cf   : > { %v437_v28 = vand.u32 2147483647, %v435_v26 }
 0x2d1   : > { %458 = vmatpush.msra.mxu2 %v437_v28 }
 0x2d3   : > { %459 = vmatpush.msra.mxu2 %v434_v29 }
 0x2d5   : > { %460 = vmatpush.msra.mxu2 %v433_v30 }
 0x2d7   : > { %461 = vmatpush.msra.mxu2 %v432_v31 }
 0x2d9   : > { %462 = vmatpush.msra.mxu2 %v431_v32 }
 0x2db   : > { %463 = vmatpush.msra.mxu2 %v411_v11 }
 0x2dd   : > { %464 = vmatpush.msra.mxu2 %v410_v6 }
 0x2de   : > { %571 = vmatmul.msk.f32.vlgmr.msra.gmra.mxu2 %vm350_vm6, %v569_v34 }
 0x2e6   : > { %572 = vmatmul.msk.f32.gmra.mxu2 %vm350_vm6, %v570_v35 }
 0x361   : > { %v466_v36 = vpop.f32.mrf.mxu2 }
 0x362   : > { %v467_v37 = vadd.f32 %v466_v36, %v814_v27 }
 0x364   : > { %v472_v38 = vmax.f32 %v467_v37, 0.0 }
 0x366   : > { %474 = vst [vmem:[%s215_s17] sm:$0xff] %v472_v38 }
 0x369   : > { %v469_v39 = vpop.f32.mrf.mxu2 }
 0x36a   : > { %v470_v40 = vadd.f32 %v469_v39, %v823_v33 }
 0x36c   : > { %v473_v41 = vmax.f32 %v470_v40, 0.0 }
 0x36e   : > { %475 = vst [vmem:[%s215_s17 + $0x8] sm:$0xff] %v473_v41 }
 0x36f   : > { %665 = shalt.err (!%p662_p3)
}
 0x370   : > { %s707_s14 = smov 128   ;;  %s708_s15 = smov 8  }
 0x371   : > { %589 = dma.vmem_to_hbm [thread:$0]  (%p777_p5), %s490_s30, 256, %s492_s6, %s477_s7, %s707_s14, %s707_s14, %s708_s15  }
 0x372 PF: > { %p595_p4 = scmp.ge.s32.totalorder %s700_s21, 2  ;;  %s506_s16 = sand.u32 1, %s688_s18  }
 0x373   : > { %s507_s17 = scalar_lea.sflag [#allocation3], %s506_s16 }
 0x374   : > { %p592_p7 = pnand %p595_p4, %p781_p6 }
 0x376   : > { %p593_p8 = pneg %p592_p7 }
 0x378   : > { %683 = dma.done.wait (%p593_p8), %s507_s17, 256  }
 0x379   : > { %685 = vsyncadd (%p593_p8), %s507_s17, 4294967040  ;;  %p15_p9 = scmp.ge.s32.totalorder %s764_s24, 4   ;;  %s914_s18 = smov %s692_s19 }
 0x37a   : > { %s915_s19 = smov %s696_s20  ;;  %s916_s20 = smov %s775_s27 }
 0x37b   : > { %s917_s21 = smov %s764_s24  ;;  %17 = sbr.rel (!%p15_p9) target bundleno = 3 (0x3), region = 78 }
 0x380   :  { %513 = vsyncpa [#allocation3], 1 }
 0x381   :  { %515 = vsyncpa [#allocation3 + $0x1], 1 }

</bundles_post_ra>
